<compile_context>
chip_gen: v7x
topology: tpu7x:2x2x1
jax: 0.10.0
libtpu: 0.0.40
codegen_flags: <defaults>
</compile_context>

<pallas_src>
import jax
import jax.numpy as jnp
from jax.experimental import pallas as pl
from jax.experimental.pallas import tpu as pltpu

LN_EPS = 1e-5  # PyTorch nn.LayerNorm default


def self_attention_kernel(q_ref, k_ref, v_ref,
                          wq_t_ref, bq_ref, wk_s_ref,
                          wv_t_ref, bv_ref, wf_t_ref, bf_ref,
                          gamma_ref, beta_ref,
                          out_ref, attn_ref):
    f32 = jnp.float32
    bf16 = jnp.bfloat16

    q = q_ref[...]          # (TB, E)    bf16
    k = k_ref[...]          # (TB, S, E) bf16
    v = v_ref[...]          # (TB, S, E) bf16

    # ---- Q projection (MXU, bf16 operands, f32 accumulation; Wq pre-transposed). ----
    Q = jnp.dot(q, wq_t_ref[...], preferred_element_type=f32) + bq_ref[...]        # (TB,E) f32
    residual = Q

    # ---- Scores with Wk folded into the single query per batch row:
    #   scores[b,s] = (Q @ (scale*Wk))[b,:] . k[b,s,:]   (+ scale*(Q.bk), a per-row
    #   constant that softmax shift-invariance cancels, hence dropped).            ----
    Qk = jnp.dot(Q.astype(bf16), wk_s_ref[...], preferred_element_type=f32)        # (TB,E)
    s3 = jnp.einsum('bqe,bse->bqs', Qk[:, None, :].astype(bf16), k,
                    preferred_element_type=f32)                                    # (TB,1,S)
    scores = jnp.sum(s3, axis=1)                                                   # (TB,S)

    # ---- Softmax over keys (f32 math; exp + approx reciprocal run on the EUP). ----
    m = jnp.max(scores, axis=-1, keepdims=True)
    p = jnp.exp(scores - m)
    attn = p * pl.reciprocal(jnp.sum(p, axis=-1, keepdims=True), approx=True)      # (TB,S)

    # dropout(attention): identity (inference mode).

    # ---- Context with the V projection deferred past the attention sum:
    #   sum_s attn[b,s]*V[b,s] = (sum_s attn[b,s]*v[b,s]) @ Wv.T + bv  (attn rows sum to 1). ----
    ctx3 = jnp.einsum('bqs,bse->bqe', attn[:, None, :].astype(bf16), v,
                      preferred_element_type=f32)                                  # (TB,1,E)
    ctx_raw = jnp.sum(ctx3, axis=1)                                                # (TB,E)
    context = jnp.dot(ctx_raw.astype(bf16), wv_t_ref[...],
                      preferred_element_type=f32) + bv_ref[...]                    # (TB,E)

    # ---- Final projection (Wf pre-transposed). ----
    out = jnp.dot(context.astype(bf16), wf_t_ref[...],
                  preferred_element_type=f32) + bf_ref[...]                        # (TB,E)

    # dropout(output): identity (inference mode).

    # ---- LayerNorm(residual + output) over the embedding dim, in f32. ----
    y = residual + out
    mean = jnp.mean(y, axis=-1, keepdims=True)
    var = jnp.mean(jnp.square(y - mean), axis=-1, keepdims=True)
    y = (y - mean) * jax.lax.rsqrt(var + LN_EPS)

    out_ref[...] = (y * gamma_ref[...] + beta_ref[...]).astype(out_ref.dtype)
    attn_ref[...] = attn.astype(attn_ref.dtype)   # lane-dense (TB, S) store


def _pick_block_b(batch):
    """Batch tile: prefer large multiples of 128 (sublane/bf16-friendly, MXU-friendly),
    otherwise take the whole batch in one block (small / irregular B)."""
    for cand in (512, 256, 128):
        if batch % cand == 0:
            return cand
    return batch


def self_attention(q, k, v, params, scale=0.125):
    B, E = q.shape
    S = k.shape[1]
    block_b = _pick_block_b(B)
    grid = (B // block_b,)

    scale_f = float(scale) if scale else 1.0
    bf16 = jnp.bfloat16
    f32 = jnp.float32

    # Free layout plumbing in the wrapper: pre-transpose Wq/Wv/Wf, fold `scale` into Wk.
    wq_t = params['wq'].T.astype(bf16)                 # Q       = q       @ wq_t + bq
    wk_s = (params['wk'] * scale_f).astype(bf16)       # Qk      = Q       @ wk_s   (contract Wk's out-dim)
    wv_t = params['wv'].T.astype(bf16)                 # context = ctx_raw @ wv_t + bv
    wf_t = params['wf'].T.astype(bf16)                 # out     = context @ wf_t + bf
    # (bk only shifts every score of a row by the same amount -> cancelled by softmax.)

    args = (
        q.astype(bf16), k.astype(bf16), v.astype(bf16),
        wq_t, params['bq'].reshape(1, E).astype(f32),
        wk_s,
        wv_t, params['bv'].reshape(1, E).astype(f32),
        wf_t, params['bf'].reshape(1, E).astype(f32),
        params['gamma'].reshape(1, E).astype(f32),
        params['beta'].reshape(1, E).astype(f32),
    )

    batch2 = lambda i: (i, 0)
    batch3 = lambda i: (i, 0, 0)
    const2 = lambda i: (0, 0)       # weights / biases stay resident across the batch grid

    in_specs = [
        pl.BlockSpec((block_b, E), batch2),        # q
        pl.BlockSpec((block_b, S, E), batch3),     # k
        pl.BlockSpec((block_b, S, E), batch3),     # v
        pl.BlockSpec((E, E), const2),              # wq_t
        pl.BlockSpec((1, E), const2),              # bq
        pl.BlockSpec((E, E), const2),              # wk_s
        pl.BlockSpec((E, E), const2),              # wv_t
        pl.BlockSpec((1, E), const2),              # bv
        pl.BlockSpec((E, E), const2),              # wf_t
        pl.BlockSpec((1, E), const2),              # bf
        pl.BlockSpec((1, E), const2),              # gamma
        pl.BlockSpec((1, E), const2),              # beta
    ]
    out_specs = (
        pl.BlockSpec((block_b, E), batch2),        # output (B, E)
        pl.BlockSpec((block_b, S), batch2),        # attention, lane-dense (B, S)
    )
    out_shapes = (
        jax.ShapeDtypeStruct((B, E), f32),
        jax.ShapeDtypeStruct((B, S), f32),
    )

    out, attn = pl.pallas_call(
        self_attention_kernel,
        grid=grid,
        in_specs=in_specs,
        out_specs=out_specs,
        out_shape=out_shapes,
        compiler_params=pltpu.CompilerParams(
            dimension_semantics=("parallel",),      # batch tiles shard across TCs on v7x
            vmem_limit_bytes=32 * 1024 * 1024,      # fits the v7x 64 MiB budget with headroom
        ),
    )(*args)

    # Reshape to the module's (B, 1, S) attention outside the kernel (layout plumbing).
    return out, attn[:, None, :]


def reference(q, k, v, p, scale):
    """Pure-JAX f32 reference mirroring the PyTorch forward (eval mode)."""
    Q = q @ p['wq'].T + p['bq']
    K = jnp.einsum('bse,fe->bsf', k, p['wk']) + p['bk']
    V = jnp.einsum('bse,fe->bsf', v, p['wv']) + p['bv']
    scores = jnp.einsum('be,bse->bs', Q, K)
    if scale:
        scores = scores * scale
    attn = jax.nn.softmax(scores, axis=-1)
    ctx = jnp.einsum('bs,bse->be', attn, V)
    out = ctx @ p['wf'].T + p['bf']
    y = Q + out
    mean = y.mean(-1, keepdims=True)
    var = ((y - mean) ** 2).mean(-1, keepdims=True)
    y = (y - mean) / jnp.sqrt(var + LN_EPS)
    return y * p['gamma'] + p['beta'], attn[:, None, :]


def init_params(key, embed_dim):
    """Deterministic init mimicking PyTorch nn.Linear (uniform +-1/sqrt(in))."""
    ks = jax.random.split(key, 8)
    bound = 1.0 / (embed_dim ** 0.5)
    u = lambda kk, shape: jax.random.uniform(kk, shape, jnp.float32, -bound, bound)
    return {
        'wq': u(ks[0], (embed_dim, embed_dim)), 'bq': u(ks[1], (embed_dim,)),
        'wk': u(ks[2], (embed_dim, embed_dim)), 'bk': u(ks[3], (embed_dim,)),
        'wv': u(ks[4], (embed_dim, embed_dim)), 'bv': u(ks[5], (embed_dim,)),
        'wf': u(ks[6], (embed_dim, embed_dim)), 'bf': u(ks[7], (embed_dim,)),
        'gamma': jnp.ones((embed_dim,), jnp.float32),
        'beta': jnp.zeros((embed_dim,), jnp.float32),
    }


if __name__ == "__main__":
    B, S, E = 8, 8, 32
    scale = 0.125

    key = jax.random.PRNGKey(0)
    kq, kk, kv, kp = jax.random.split(key, 4)
    q = jax.random.normal(kq, (B, E), jnp.float32)
    k = jax.random.normal(kk, (B, S, E), jnp.float32)
    v = jax.random.normal(kv, (B, S, E), jnp.float32)
    params = init_params(kp, E)

    out, attn = self_attention(q, k, v, params, scale=scale)
    jax.block_until_ready((out, attn))

    out_ref, attn_ref = reference(q, k, v, params, scale)
    assert out.shape == (B, E) and attn.shape == (B, 1, S)
    # bf16 MXU operands (f32 accumulation) vs. an all-f32 reference -> looser tolerance.
    assert jnp.allclose(out, out_ref, atol=3e-2, rtol=3e-2), \
        float(jnp.max(jnp.abs(out - out_ref)))
    assert jnp.allclose(attn, attn_ref, atol=1e-2, rtol=1e-2), \
        float(jnp.max(jnp.abs(attn - attn_ref)))

    print("KERNEL_OK")
</pallas_src>

<mosaic_0001>
module attributes {stable_mosaic.version = 11 : i64} {
  func.func @self_attention_kernel(%arg0: i32, %arg1: memref<8x32xbf16, #tpu.memory_space<vmem>>, %arg2: memref<8x8x32xbf16, #tpu.memory_space<vmem>>, %arg3: memref<8x8x32xbf16, #tpu.memory_space<vmem>>, %arg4: memref<32x32xbf16, #tpu.memory_space<vmem>>, %arg5: memref<1x32xf32, #tpu.memory_space<vmem>>, %arg6: memref<32x32xbf16, #tpu.memory_space<vmem>>, %arg7: memref<32x32xbf16, #tpu.memory_space<vmem>>, %arg8: memref<1x32xf32, #tpu.memory_space<vmem>>, %arg9: memref<32x32xbf16, #tpu.memory_space<vmem>>, %arg10: memref<1x32xf32, #tpu.memory_space<vmem>>, %arg11: memref<1x32xf32, #tpu.memory_space<vmem>>, %arg12: memref<1x32xf32, #tpu.memory_space<vmem>>, %arg13: memref<8x32xf32, #tpu.memory_space<vmem>>, %arg14: memref<8x8xf32, #tpu.memory_space<vmem>>) attributes {dimension_semantics = [#tpu.dimension_semantics<parallel>], iteration_bounds = array<i64: 1>, scalar_prefetch = 0 : i64, scratch_operands = 0 : i64, tpu.core_type = #tpu.core_type<tc>, window_params = [{transform_indices = @transform_0, window_bounds = array<i64: 8, 32>}, {transform_indices = @transform_1, window_bounds = array<i64: 8, 8, 32>}, {transform_indices = @transform_2, window_bounds = array<i64: 8, 8, 32>}, {pipeline_mode = #tpu.pipeline_mode<synchronous>, transform_indices = @transform_3, window_bounds = array<i64: 32, 32>}, {pipeline_mode = #tpu.pipeline_mode<synchronous>, transform_indices = @transform_4, window_bounds = array<i64: 1, 32>}, {pipeline_mode = #tpu.pipeline_mode<synchronous>, transform_indices = @transform_5, window_bounds = array<i64: 32, 32>}, {pipeline_mode = #tpu.pipeline_mode<synchronous>, transform_indices = @transform_6, window_bounds = array<i64: 32, 32>}, {pipeline_mode = #tpu.pipeline_mode<synchronous>, transform_indices = @transform_7, window_bounds = array<i64: 1, 32>}, {pipeline_mode = #tpu.pipeline_mode<synchronous>, transform_indices = @transform_8, window_bounds = array<i64: 32, 32>}, {pipeline_mode = #tpu.pipeline_mode<synchronous>, transform_indices = @transform_9, window_bounds = array<i64: 1, 32>}, {pipeline_mode = #tpu.pipeline_mode<synchronous>, transform_indices = @transform_10, window_bounds = array<i64: 1, 32>}, {pipeline_mode = #tpu.pipeline_mode<synchronous>, transform_indices = @transform_11, window_bounds = array<i64: 1, 32>}, {transform_indices = @transform_12, window_bounds = array<i64: 8, 32>}, {transform_indices = @transform_13, window_bounds = array<i64: 8, 8>}]} {
    %c0 = arith.constant 0 : index
    %c0_0 = arith.constant 0 : index
    %0 = vector.load %arg1[%c0, %c0_0] : memref<8x32xbf16, #tpu.memory_space<vmem>>, vector<8x32xbf16>
    %c0_1 = arith.constant 0 : index
    %c0_2 = arith.constant 0 : index
    %c0_3 = arith.constant 0 : index
    %1 = vector.load %arg2[%c0_1, %c0_2, %c0_3] : memref<8x8x32xbf16, #tpu.memory_space<vmem>>, vector<8x8x32xbf16>
    %c0_4 = arith.constant 0 : index
    %c0_5 = arith.constant 0 : index
    %c0_6 = arith.constant 0 : index
    %2 = vector.load %arg3[%c0_4, %c0_5, %c0_6] : memref<8x8x32xbf16, #tpu.memory_space<vmem>>, vector<8x8x32xbf16>
    %c0_7 = arith.constant 0 : index
    %c0_8 = arith.constant 0 : index
    %3 = vector.load %arg4[%c0_7, %c0_8] : memref<32x32xbf16, #tpu.memory_space<vmem>>, vector<32x32xbf16>
    %cst = arith.constant dense<0.000000e+00> : vector<8x32xf32>
    %4 = tpu.matmul %0, %3, %cst {dimension_numbers = #tpu.dot_dimension_numbers<[1], [0], [0], [1], [0, 0, 1, 1], [], []>} : vector<8x32xbf16>, vector<32x32xbf16>, vector<8x32xf32> -> vector<8x32xf32>
    %c0_9 = arith.constant 0 : index
    %c0_10 = arith.constant 0 : index
    %5 = vector.load %arg5[%c0_9, %c0_10] : memref<1x32xf32, #tpu.memory_space<vmem>>, vector<1x32xf32>
    %6 = vector.broadcast %5 : vector<1x32xf32> to vector<8x32xf32>
    %7 = arith.addf %4, %6 : vector<8x32xf32>
    %8 = arith.truncf %7 : vector<8x32xf32> to vector<8x32xbf16>
    %c0_11 = arith.constant 0 : index
    %c0_12 = arith.constant 0 : index
    %9 = vector.load %arg6[%c0_11, %c0_12] : memref<32x32xbf16, #tpu.memory_space<vmem>>, vector<32x32xbf16>
    %cst_13 = arith.constant dense<0.000000e+00> : vector<8x32xf32>
    %10 = tpu.matmul %8, %9, %cst_13 {dimension_numbers = #tpu.dot_dimension_numbers<[1], [0], [0], [1], [0, 0, 1, 1], [], []>} : vector<8x32xbf16>, vector<32x32xbf16>, vector<8x32xf32> -> vector<8x32xf32>
    %11 = vector.shape_cast %10 : vector<8x32xf32> to vector<8x1x32xf32>
    %12 = arith.truncf %11 : vector<8x1x32xf32> to vector<8x1x32xbf16>
    "tpu.trace_start"() <{level = 10 : i32, message = "bqe,bse->bqs"}> : () -> ()
    %cst_14 = arith.constant dense<0.000000e+00> : vector<8x1x8xf32>
    %13 = tpu.matmul %12, %1, %cst_14 {dimension_numbers = #tpu.dot_dimension_numbers<[2], [2], [1], [1], [0, 0, 0, 1, 1, 1], [0], [0]>} : vector<8x1x32xbf16>, vector<8x8x32xbf16>, vector<8x1x8xf32> -> vector<8x1x8xf32>
    "tpu.trace_stop"() : () -> ()
    %cst_15 = arith.constant dense<0.000000e+00> : vector<8x8xf32>
    %14 = vector.multi_reduction <add>, %13, %cst_15 [1] : vector<8x1x8xf32> to vector<8x8xf32>
    %cst_16 = arith.constant dense<0xFF800000> : vector<8xf32>
    %15 = vector.multi_reduction <maximumf>, %14, %cst_16 [1] : vector<8x8xf32> to vector<8xf32>
    %16 = vector.shape_cast %15 : vector<8xf32> to vector<8x1xf32>
    %17 = vector.broadcast %16 : vector<8x1xf32> to vector<8x8xf32>
    %18 = arith.subf %14, %17 : vector<8x8xf32>
    %19 = math.exp %18 : vector<8x8xf32>
    %cst_17 = arith.constant dense<0.000000e+00> : vector<8xf32>
    %20 = vector.multi_reduction <add>, %19, %cst_17 [1] : vector<8x8xf32> to vector<8xf32>
    %21 = vector.shape_cast %20 : vector<8xf32> to vector<8x1xf32>
    %22 = tpu.reciprocal %21 {approx = true} : vector<8x1xf32> -> vector<8x1xf32>
    %23 = vector.broadcast %22 : vector<8x1xf32> to vector<8x8xf32>
    %24 = arith.mulf %19, %23 : vector<8x8xf32>
    %25 = vector.shape_cast %24 : vector<8x8xf32> to vector<8x1x8xf32>
    %26 = arith.truncf %25 : vector<8x1x8xf32> to vector<8x1x8xbf16>
    "tpu.trace_start"() <{level = 10 : i32, message = "bqs,bse->bqe"}> : () -> ()
    %cst_18 = arith.constant dense<0.000000e+00> : vector<8x1x32xf32>
    %27 = tpu.matmul %26, %2, %cst_18 {dimension_numbers = #tpu.dot_dimension_numbers<[2], [1], [1], [2], [0, 0, 0, 1, 1, 2], [0], [0]>} : vector<8x1x8xbf16>, vector<8x8x32xbf16>, vector<8x1x32xf32> -> vector<8x1x32xf32>
    "tpu.trace_stop"() : () -> ()
    %cst_19 = arith.constant dense<0.000000e+00> : vector<8x32xf32>
    %28 = vector.multi_reduction <add>, %27, %cst_19 [1] : vector<8x1x32xf32> to vector<8x32xf32>
    %29 = arith.truncf %28 : vector<8x32xf32> to vector<8x32xbf16>
    %c0_20 = arith.constant 0 : index
    %c0_21 = arith.constant 0 : index
    %30 = vector.load %arg7[%c0_20, %c0_21] : memref<32x32xbf16, #tpu.memory_space<vmem>>, vector<32x32xbf16>
    %cst_22 = arith.constant dense<0.000000e+00> : vector<8x32xf32>
    %31 = tpu.matmul %29, %30, %cst_22 {dimension_numbers = #tpu.dot_dimension_numbers<[1], [0], [0], [1], [0, 0, 1, 1], [], []>} : vector<8x32xbf16>, vector<32x32xbf16>, vector<8x32xf32> -> vector<8x32xf32>
    %c0_23 = arith.constant 0 : index
    %c0_24 = arith.constant 0 : index
    %32 = vector.load %arg8[%c0_23, %c0_24] : memref<1x32xf32, #tpu.memory_space<vmem>>, vector<1x32xf32>
    %33 = vector.broadcast %32 : vector<1x32xf32> to vector<8x32xf32>
    %34 = arith.addf %31, %33 : vector<8x32xf32>
    %35 = arith.truncf %34 : vector<8x32xf32> to vector<8x32xbf16>
    %c0_25 = arith.constant 0 : index
    %c0_26 = arith.constant 0 : index
    %36 = vector.load %arg9[%c0_25, %c0_26] : memref<32x32xbf16, #tpu.memory_space<vmem>>, vector<32x32xbf16>
    %cst_27 = arith.constant dense<0.000000e+00> : vector<8x32xf32>
    %37 = tpu.matmul %35, %36, %cst_27 {dimension_numbers = #tpu.dot_dimension_numbers<[1], [0], [0], [1], [0, 0, 1, 1], [], []>} : vector<8x32xbf16>, vector<32x32xbf16>, vector<8x32xf32> -> vector<8x32xf32>
    %c0_28 = arith.constant 0 : index
    %c0_29 = arith.constant 0 : index
    %38 = vector.load %arg10[%c0_28, %c0_29] : memref<1x32xf32, #tpu.memory_space<vmem>>, vector<1x32xf32>
    %39 = vector.broadcast %38 : vector<1x32xf32> to vector<8x32xf32>
    %40 = arith.addf %37, %39 : vector<8x32xf32>
    %41 = arith.addf %7, %40 : vector<8x32xf32>
    %cst_30 = arith.constant dense<0.000000e+00> : vector<8xf32>
    %42 = vector.multi_reduction <add>, %41, %cst_30 [1] : vector<8x32xf32> to vector<8xf32>
    %43 = vector.shape_cast %42 : vector<8xf32> to vector<8x1xf32>
    %cst_31 = arith.constant 3.200000e+01 : f32
    %44 = vector.broadcast %cst_31 : f32 to vector<8x1xf32>
    %45 = arith.divf %43, %44 : vector<8x1xf32>
    %46 = vector.broadcast %45 : vector<8x1xf32> to vector<8x32xf32>
    %47 = arith.subf %41, %46 : vector<8x32xf32>
    %48 = arith.mulf %47, %47 : vector<8x32xf32>
    %cst_32 = arith.constant dense<0.000000e+00> : vector<8xf32>
    %49 = vector.multi_reduction <add>, %48, %cst_32 [1] : vector<8x32xf32> to vector<8xf32>
    %50 = vector.shape_cast %49 : vector<8xf32> to vector<8x1xf32>
    %cst_33 = arith.constant 3.200000e+01 : f32
    %51 = vector.broadcast %cst_33 : f32 to vector<8x1xf32>
    %52 = arith.divf %50, %51 : vector<8x1xf32>
    %53 = vector.broadcast %45 : vector<8x1xf32> to vector<8x32xf32>
    %54 = arith.subf %41, %53 : vector<8x32xf32>
    %cst_34 = arith.constant 9.99999974E-6 : f32
    %55 = vector.broadcast %cst_34 : f32 to vector<8x1xf32>
    %56 = arith.addf %52, %55 : vector<8x1xf32>
    %57 = math.rsqrt %56 : vector<8x1xf32>
    %58 = vector.broadcast %57 : vector<8x1xf32> to vector<8x32xf32>
    %59 = arith.mulf %54, %58 : vector<8x32xf32>
    %c0_35 = arith.constant 0 : index
    %c0_36 = arith.constant 0 : index
    %60 = vector.load %arg11[%c0_35, %c0_36] : memref<1x32xf32, #tpu.memory_space<vmem>>, vector<1x32xf32>
    %61 = vector.broadcast %60 : vector<1x32xf32> to vector<8x32xf32>
    %62 = arith.mulf %59, %61 : vector<8x32xf32>
    %c0_37 = arith.constant 0 : index
    %c0_38 = arith.constant 0 : index
    %63 = vector.load %arg12[%c0_37, %c0_38] : memref<1x32xf32, #tpu.memory_space<vmem>>, vector<1x32xf32>
    %64 = vector.broadcast %63 : vector<1x32xf32> to vector<8x32xf32>
    %65 = arith.addf %62, %64 : vector<8x32xf32>
    %c0_39 = arith.constant 0 : index
    %c0_40 = arith.constant 0 : index
    %66 = vector.load %arg13[%c0_39, %c0_40] : memref<8x32xf32, #tpu.memory_space<vmem>>, vector<8x32xf32>
    tpu.vector_store %arg13[%c0_39, %c0_40], %65 {strides = array<i32>} : memref<8x32xf32, #tpu.memory_space<vmem>>, vector<8x32xf32>,
    %c0_41 = arith.constant 0 : index
    %c0_42 = arith.constant 0 : index
    %67 = vector.load %arg14[%c0_41, %c0_42] : memref<8x8xf32, #tpu.memory_space<vmem>>, vector<8x8xf32>
    tpu.vector_store %arg14[%c0_41, %c0_42], %24 {strides = array<i32>} : memref<8x8xf32, #tpu.memory_space<vmem>>, vector<8x8xf32>,
    return
  }
  func.func @transform_0(%arg0: i32) -> (i32, i32) {
    %c0_i32 = arith.constant 0 : i32
    %c0_i32_0 = arith.constant 0 : i32
    return %arg0, %c0_i32 : i32, i32
  }
  func.func @transform_1(%arg0: i32) -> (i32, i32, i32) {
    %c0_i32 = arith.constant 0 : i32
    %c0_i32_0 = arith.constant 0 : i32
    %c0_i32_1 = arith.constant 0 : i32
    return %arg0, %c0_i32, %c0_i32_0 : i32, i32, i32
  }
  func.func @transform_2(%arg0: i32) -> (i32, i32, i32) {
    %c0_i32 = arith.constant 0 : i32
    %c0_i32_0 = arith.constant 0 : i32
    %c0_i32_1 = arith.constant 0 : i32
    return %arg0, %c0_i32, %c0_i32_0 : i32, i32, i32
  }
  func.func @transform_3(%arg0: i32) -> (i32, i32) {
    %c0_i32 = arith.constant 0 : i32
    %c0_i32_0 = arith.constant 0 : i32
    %c0_i32_1 = arith.constant 0 : i32
    return %c0_i32, %c0_i32_0 : i32, i32
  }
  func.func @transform_4(%arg0: i32) -> (i32, i32) {
    %c0_i32 = arith.constant 0 : i32
    %c0_i32_0 = arith.constant 0 : i32
    %c0_i32_1 = arith.constant 0 : i32
    return %c0_i32, %c0_i32_0 : i32, i32
  }
  func.func @transform_5(%arg0: i32) -> (i32, i32) {
    %c0_i32 = arith.constant 0 : i32
    %c0_i32_0 = arith.constant 0 : i32
    %c0_i32_1 = arith.constant 0 : i32
    return %c0_i32, %c0_i32_0 : i32, i32
  }
  func.func @transform_6(%arg0: i32) -> (i32, i32) {
    %c0_i32 = arith.constant 0 : i32
    %c0_i32_0 = arith.constant 0 : i32
    %c0_i32_1 = arith.constant 0 : i32
    return %c0_i32, %c0_i32_0 : i32, i32
  }
  func.func @transform_7(%arg0: i32) -> (i32, i32) {
    %c0_i32 = arith.constant 0 : i32
    %c0_i32_0 = arith.constant 0 : i32
    %c0_i32_1 = arith.constant 0 : i32
    return %c0_i32, %c0_i32_0 : i32, i32
  }
  func.func @transform_8(%arg0: i32) -> (i32, i32) {
    %c0_i32 = arith.constant 0 : i32
    %c0_i32_0 = arith.constant 0 : i32
    %c0_i32_1 = arith.constant 0 : i32
    return %c0_i32, %c0_i32_0 : i32, i32
  }
  func.func @transform_9(%arg0: i32) -> (i32, i32) {
    %c0_i32 = arith.constant 0 : i32
    %c0_i32_0 = arith.constant 0 : i32
    %c0_i32_1 = arith.constant 0 : i32
    return %c0_i32, %c0_i32_0 : i32, i32
  }
  func.func @transform_10(%arg0: i32) -> (i32, i32) {
    %c0_i32 = arith.constant 0 : i32
    %c0_i32_0 = arith.constant 0 : i32
    %c0_i32_1 = arith.constant 0 : i32
    return %c0_i32, %c0_i32_0 : i32, i32
  }
  func.func @transform_11(%arg0: i32) -> (i32, i32) {
    %c0_i32 = arith.constant 0 : i32
    %c0_i32_0 = arith.constant 0 : i32
    %c0_i32_1 = arith.constant 0 : i32
    return %c0_i32, %c0_i32_0 : i32, i32
  }
  func.func @transform_12(%arg0: i32) -> (i32, i32) {
    %c0_i32 = arith.constant 0 : i32
    %c0_i32_0 = arith.constant 0 : i32
    return %arg0, %c0_i32 : i32, i32
  }
  func.func @transform_13(%arg0: i32) -> (i32, i32) {
    %c0_i32 = arith.constant 0 : i32
    %c0_i32_0 = arith.constant 0 : i32
    return %arg0, %c0_i32 : i32, i32
  }
}

</mosaic_0001>

<bundles_post_ra>
// kernel: tpu_custom_call.1
= control target key start
LH: loop header
LB: loop body
LE: loop exit
PB: predicated region body
PF: predicated region fallthrough
CT: control target
= control target key end

     0   :  { %19 = vsyncpa [#allocation3], 0  ;;  %s2274_s0 = inlined_call_operand.hbm [shape: bf16[8,32], index: 0, kind: input, shape index: {}]   ;;  %s2275_s1 = inlined_call_operand.hbm [shape: bf16[8,8,32], index: 1, kind: input, shape index: {}]   ;;  %s2276_s2 = inlined_call_operand.hbm [shape: bf16[8,8,32], index: 2, kind: input, shape index: {}]   ;;  %s2277_s3 = inlined_call_operand.hbm [shape: bf16[32,32], index: 3, kind: input, shape index: {}]   ;;  %s2278_s4 = inlined_call_operand.vmem [shape: f32[1,32], index: 4, kind: input, shape index: {}]   ;;  %s2279_s5 = inlined_call_operand.vmem [shape: bf16[32,32], index: 5, kind: input, shape index: {}]   ;;  %s2280_s6 = inlined_call_operand.hbm [shape: bf16[32,32], index: 6, kind: input, shape index: {}]   ;;  %s2281_s7 = inlined_call_operand.vmem [shape: f32[1,32], index: 7, kind: input, shape index: {}]   ;;  %s2282_s8 = inlined_call_operand.hbm [shape: bf16[32,32], index: 8, kind: input, shape index: {}]   ;;  %s2283_s9 = inlined_call_operand.vmem [shape: f32[1,32], index: 9, kind: input, shape index: {}]   ;;  %s2284_s10 = inlined_call_operand.vmem [shape: f32[1,32], index: 10, kind: input, shape index: {}]   ;;  %s2285_s11 = inlined_call_operand.vmem [shape: f32[1,32], index: 11, kind: input, shape index: {}]   ;;  %s2286_s12 = inlined_call_operand.hbm [shape: f32[8,32], index: 12, kind: output, shape index: {0}]   ;;  %s2287_s13 = inlined_call_operand.hbm [shape: f32[8,8], index: 13, kind: output, shape index: {1}]  }
   0x1   :  { %20 = vsyncpa [#allocation6], 0 }
   0x2   :  { %21 = vsyncpa [#allocation9], 0 }
   0x3   :  { %22 = vsyncpa [#allocation12], 0 }
   0x4   :  { %23 = vsyncpa [#allocation4], 0 }
   0x5   :  { %24 = vsyncpa [#allocation15], 0  ;;  %s1916_s25 = smov [#allocation5]   ;;  %s1728_s29 = scalar_lea.hbm %s2275_s1, 512 }
   0x6   :  { %s40_s26 = sshll.u32 %s1916_s25, 4  ;;  %p1729_p0 = scmp.ne.s32.totalorder %s2275_s1, %s1728_s29  ;;  %s41_s26 = int_to_ptr.vmem [resolvable:$true] %s40_s26 }
   0x7   :  { %p1732_p1 = scmp.lt.u32.totalorder %s1728_s29, %s2275_s1 }
   0x9   :  { %p1734_p2 = pnand %p1732_p1, %p1729_p0 }
   0xb   :  { %1737 = shalt.err (!%p1734_p2)
}
   0xc   :  { %s1738_s17 = scalar_lea.vmem %s41_s26, 512  ;;  %p1743_p4 = scmp.lt.s32.totalorder %s41_s26, %s41_s26 }
   0xd   :  { %p1739_p3 = scmp.ne.s32.totalorder %s41_s26, %s1738_s17  ;;  %p1744_p5 = scmp.lt.s32.totalorder %s1738_s17, %s1738_s17 }
   0xf   :  { %p1745_p6 = por %p1744_p5, %p1743_p4 }
  0x11   :  { %p1746_p7 = pnand %p1745_p6, %p1739_p3 }
  0x13   :  { %1749 = shalt.err (!%p1746_p7)
}
  0x14   :  { %s1917_s18 = smov 64   ;;  %s1918_s19 = smov 4  }
  0x15   :  { %46 = dma.hbm_to_vmem [thread:$0]  %s2275_s1, 512, %s41_s26, [#allocation6], %s1917_s18, %s1917_s18, %s1918_s19  }
  0x16   :  { %s1919_s22 = smov [#allocation8]   ;;  %s1920_s24 = smov [#allocation2]  }
  0x17   :  { %s64_s23 = sshll.u32 %s1919_s22, 4  ;;  %s31_s25 = sshll.u32 %s1920_s24, 4  ;;  %s65_s23 = int_to_ptr.vmem [resolvable:$true] %s64_s23  ;;  %s32_s25 = int_to_ptr.vmem [resolvable:$true] %s31_s25 }
  0x18   :  { %s1750_s29 = scalar_lea.hbm %s2277_s3, 256 }
  0x19   :  { %p1751_p8 = scmp.ne.s32.totalorder %s2277_s3, %s1750_s29  ;;  %p1754_p9 = scmp.lt.u32.totalorder %s1750_s29, %s2277_s3 }
  0x1b   :  { %p1756_p10 = pnand %p1754_p9, %p1751_p8 }
  0x1d   :  { %1759 = shalt.err (!%p1756_p10)
}
  0x1e   :  { %s1760_s1 = scalar_lea.vmem %s65_s23, 256  ;;  %p1765_p12 = scmp.lt.s32.totalorder %s65_s23, %s65_s23 }
  0x1f   :  { %p1761_p11 = scmp.ne.s32.totalorder %s65_s23, %s1760_s1  ;;  %p1766_p13 = scmp.lt.s32.totalorder %s1760_s1, %s1760_s1 }
  0x21   :  { %p1767_p0 = por %p1766_p13, %p1765_p12 }
  0x23   :  { %p1768_p1 = pnand %p1767_p0, %p1761_p11 }
  0x25   :  { %1771 = shalt.err (!%p1768_p1)
}
  0x26   :  { %70 = dma.hbm_to_vmem [thread:$0]  %s2277_s3, 256, %s65_s23, [#allocation9], %s1917_s18, %s1917_s18, %s1918_s19  }
  0x27   :  { %s1772_s22 = scalar_lea.hbm %s2274_s0, 64 }
  0x28   :  { %p1773_p2 = scmp.ne.s32.totalorder %s2274_s0, %s1772_s22  ;;  %p1776_p3 = scmp.lt.u32.totalorder %s1772_s22, %s2274_s0 }
  0x2a   :  { %p1778_p4 = pnand %p1776_p3, %p1773_p2 }
  0x2c   :  { %1781 = shalt.err (!%p1778_p4)
}
  0x2d   :  { %s1782_s30 = scalar_lea.vmem %s32_s25, 64  ;;  %p1787_p6 = scmp.lt.s32.totalorder %s32_s25, %s32_s25 }
  0x2e   :  { %p1783_p5 = scmp.ne.s32.totalorder %s32_s25, %s1782_s30  ;;  %p1788_p7 = scmp.lt.s32.totalorder %s1782_s30, %s1782_s30 }
  0x30   :  { %p1789_p8 = por %p1788_p7, %p1787_p6 }
  0x32   :  { %p1790_p9 = pnand %p1789_p8, %p1783_p5 }
  0x34   :  { %1793 = shalt.err (!%p1790_p9)
}
  0x35   :  { %34 = dma.hbm_to_vmem [thread:$0]  %s2274_s0, 64, %s32_s25, [#allocation3]  }
  0x36   :  { %s1921_s14 = smov [#allocation7]   ;;  %s1922_s16 = smov [#allocation10]  }
  0x37   :  { %s52_s15 = sshll.u32 %s1921_s14, 4  ;;  %s80_s1 = sshll.u32 %s1922_s16, 4  ;;  %s53_s15 = int_to_ptr.vmem [resolvable:$true] %s52_s15  ;;  %s81_s1 = int_to_ptr.vmem [resolvable:$true] %s80_s1 }
  0x38   :  { %s1794_s20 = scalar_lea.hbm %s2276_s2, 512 }
  0x39   :  { %p1795_p10 = scmp.ne.s32.totalorder %s2276_s2, %s1794_s20  ;;  %p1798_p11 = scmp.lt.u32.totalorder %s1794_s20, %s2276_s2 }
  0x3b   :  { %p1800_p12 = pnand %p1798_p11, %p1795_p10 }
  0x3d   :  { %1803 = shalt.err (!%p1800_p12)
}
  0x3e   :  { %s1804_s0 = scalar_lea.vmem %s53_s15, 512  ;;  %p1809_p0 = scmp.lt.s32.totalorder %s53_s15, %s53_s15 }
  0x3f   :  { %p1805_p13 = scmp.ne.s32.totalorder %s53_s15, %s1804_s0  ;;  %p1810_p1 = scmp.lt.s32.totalorder %s1804_s0, %s1804_s0 }
  0x41   :  { %p1811_p2 = por %p1810_p1, %p1809_p0 }
  0x43   :  { %p1812_p3 = pnand %p1811_p2, %p1805_p13 }
  0x45   :  { %1815 = shalt.err (!%p1812_p3)
}
  0x46   :  { %58 = dma.hbm_to_vmem [thread:$0]  %s2276_s2, 512, %s53_s15, [#allocation6], %s1917_s18, %s1917_s18, %s1918_s19  }
  0x47   :  { %s1816_s3 = scalar_lea.hbm %s2280_s6, 256 }
  0x48   :  { %p1817_p4 = scmp.ne.s32.totalorder %s2280_s6, %s1816_s3  ;;  %p1820_p5 = scmp.lt.u32.totalorder %s1816_s3, %s2280_s6 }
  0x4a   :  { %p1822_p6 = pnand %p1820_p5, %p1817_p4 }
  0x4c   :  { %1825 = shalt.err (!%p1822_p6)
}
  0x4d   :  { %s1826_s17 = scalar_lea.vmem %s81_s1, 256  ;;  %p1831_p8 = scmp.lt.s32.totalorder %s81_s1, %s81_s1 }
  0x4e   :  { %p1827_p7 = scmp.ne.s32.totalorder %s81_s1, %s1826_s17  ;;  %p1832_p9 = scmp.lt.s32.totalorder %s1826_s17, %s1826_s17 }
  0x50   :  { %p1833_p10 = por %p1832_p9, %p1831_p8 }
  0x52   :  { %p1834_p11 = pnand %p1833_p10, %p1827_p7 }
  0x54   :  { %1837 = shalt.err (!%p1834_p11)
}
  0x55   :  { %86 = dma.hbm_to_vmem [thread:$0]  %s2280_s6, 256, %s81_s1, [#allocation9], %s1917_s18, %s1917_s18, %s1918_s19  }
  0x56   :  { %s1923_s20 = smov [#allocation11]   ;;  %s1838_s27 = scalar_lea.hbm %s2282_s8, 256 }
  0x57   :  { %s94_s21 = sshll.u32 %s1923_s20, 4  ;;  %p1839_p12 = scmp.ne.s32.totalorder %s2282_s8, %s1838_s27  ;;  %s95_s21 = int_to_ptr.vmem [resolvable:$true] %s94_s21 }
  0x58   :  { %p1842_p13 = scmp.lt.u32.totalorder %s1838_s27, %s2282_s8 }
  0x5a   :  { %p1844_p0 = pnand %p1842_p13, %p1839_p12 }
  0x5c   :  { %1847 = shalt.err (!%p1844_p0)
}
  0x5d   :  { %s1848_s30 = scalar_lea.vmem %s95_s21, 256  ;;  %p1853_p2 = scmp.lt.s32.totalorder %s95_s21, %s95_s21 }
  0x5e   :  { %p1849_p1 = scmp.ne.s32.totalorder %s95_s21, %s1848_s30  ;;  %p1854_p3 = scmp.lt.s32.totalorder %s1848_s30, %s1848_s30 }
  0x60   :  { %p1855_p4 = por %p1854_p3, %p1853_p2 }
  0x62   :  { %p1856_p5 = pnand %p1855_p4, %p1849_p1 }
  0x64   :  { %1859 = shalt.err (!%p1856_p5)
}
  0x65   :  { %100 = dma.hbm_to_vmem [thread:$0]  %s2282_s8, 256, %s95_s21, [#allocation12], %s1917_s18, %s1917_s18, %s1918_s19  }
  0x66   :  { %1904 = dma.done.wait [#allocation3], 64  }
  0x67   :  { %1905 = vsyncadd [#allocation3], 4294967232 }
  0x68   :  { %1906 = dma.done.wait [#allocation6], 1024  }
  0x69   :  { %1907 = vsyncadd [#allocation6], 4294966272 }
  0x6a   :  { %1908 = dma.done.wait [#allocation9], 512  }
  0x6b   :  { %1909 = vsyncadd [#allocation9], 4294966784 }
  0x6c   :  { %1910 = dma.done.wait [#allocation12], 256  }
  0x6d   :  { %1911 = vsyncadd [#allocation12], 4294967040  ;;  %v1924_v0 = vmov 0.0   ;;  %vm1925_vm0 = vmmov 0   ;;  %v1700_v1 = vld [vmem:[#allocation8] sm:$0xff]   ;;  %v1701_v2 = vld [vmem:[#allocation8 + $0x8] sm:$0xff]   ;;  %v275_v19 = vlaneseq }
  0x6e   :  { %1559 = vmatprep.subr.bf16.mxu0 %v1924_v0  ;;  %1563 = vmatprep.mubr.msk.bf16.mxu0 %vm1925_vm0, %v1924_v0  ;;  %vm166_vm1 = vcmask 261120   ;;  %v1702_v3 = vld [vmem:[%s2279_s5] sm:$0xff]   ;;  %v126_v4 = vld [vmem:[#allocation2] sm:$0xf]  ;;  %v1703_v5 = vld [vmem:[%s2279_s5 + $0x8] sm:$0xff]   ;;  %vm721_vm2 = vcmask 1041409  }
  0x6f   :  { %1567 = vmatprep.subr.bf16.mxu1 %v1924_v0  ;;  %1571 = vmatprep.mubr.msk.bf16.mxu1 %vm1925_vm0, %v1924_v0  ;;  %v1482_v6 = vld [vmem:[%s2278_s4] ss:$0 sm:$0xff]  ;;  %v127_v13 = vld [vmem:[#allocation5] sm:$0xf]  ;;  %v128_v15 = vld [vmem:[#allocation5 + $0x4] sm:$0xf] }
  0x70   :  { %1560 = vmatpush3.bf16.msra.mxu0 %v1700_v1  ;;  %1568 = vmatpush3.bf16.msra.mxu1 %v1702_v3  ;;  %v340_v14 = vsel %vm166_vm1, %v127_v13, 0  ;;  %v386_v16 = vsel %vm166_vm1, %v128_v15, 0  ;;  %v1926_v17 = vmov 1966171168   ;;  %v276_v21 = vshrl.u32 %v275_v19, 7 }
  0x71   :  { %1561 = vmatprep.subr.bf16.mxu0 %v1924_v0  ;;  %1569 = vmatprep.subr.bf16.mxu1 %v1924_v0  ;;  %v273_v18 = vunpack.c.l.s4 %v1926_v17  ;;  %v129_v30 = vld [vmem:[#allocation5 + $0x8] sm:$0xf]  ;;  %v130_v32 = vld [vmem:[#allocation5 + $0xc] sm:$0xf]  ;;  %v131_v39 = vld [vmem:[#allocation5 + $0x10] sm:$0xf] }
  0x72   :  { %v432_v34 = vsel %vm166_vm1, %v129_v30, 0  ;;  %v478_v37 = vsel %vm166_vm1, %v130_v32, 0  ;;  %v132_v42 = vld [vmem:[#allocation5 + $0x14] sm:$0xf]  ;;  %v524_v44 = vsel %vm166_vm1, %v131_v39, 0  ;;  %vm724_vm3 = vcmask 1042434  }
  0x73   :  { %v274_v20 = vunpack.c.0.s8 %v273_v18  ;;  %v570_v47 = vsel %vm166_vm1, %v132_v42, 0  ;;  %v133_v49 = vld [vmem:[#allocation5 + $0x18] sm:$0xf]  ;;  %v134_v51 = vld [vmem:[#allocation5 + $0x1c] sm:$0xf]  ;;  %vm727_vm4 = vcmask 1043459  }
  0x74   :  { %1562 = vmatpush3.bf16.msra.mxu0 %v1701_v2  ;;  %1570 = vmatpush3.bf16.msra.mxu1 %v1703_v5  ;;  %v616_v53 = vsel %vm166_vm1, %v133_v49, 0  ;;  %v662_v55 = vsel %vm166_vm1, %v134_v51, 0  ;;  %vm730_vm5 = vcmask 1044484   ;;  %vm733_vm6 = vcmask 1045509  }
  0x75   :  { %1575 = vmatprep.subr.bf16.mxu0 %v1924_v0  ;;  %1581 = vmatprep.subr.bf16.mxu1 %v1924_v0  ;;  %v277_v22 = vsub.s32 %v274_v20, %v276_v21  ;;  %vm736_vm7 = vcmask 1046534   ;;  %vm739_vm8 = vcmask 1047559   ;;  %vm742_vm9 = vcmask 64512  }
  0x76   :  { %vm848_vm10 = vcmask 1043456  }
  0x77   :  { %1564 = vmatmul.mubr.msk.bf16.vlgmr.msra.gmra.mrb[0].mxu0 %vm166_vm1, %v126_v4 }
  0x78   :  { %1577 = vmatprep.mubr.msk.bf16.mxu0 %vm1925_vm0, %v1924_v0 }
  0x7d   :  { %1576 = vmatpush3.bf16.xpose.msra.mxu0 %v340_v14 }
  0x7e   :  { %1587 = vmatprep.subr.bf16.mxu0 %v1924_v0 }
 0x14a   :  { %v204_v7 = vpop.f32.mrb[0].mxu0 }
 0x14b   :  { %v2108_v8 = vadd.f32 %v1482_v6, %v204_v7  ;;  %v1565_v9 = vpop.f32.mrb[1].mxu0 }
 0x14c   :  { %v207_v10 = vpop.f32.mrb[2].mxu0 }
 0x14d   :  { %v210_v11 = vpack.c.bf16 %v2108_v8, %v2108_v8  ;;  %v1566_v12 = vpop.f32.mrb[3].mxu0 }
 0x14f   :  { %1572 = vmatmul.mubr.msk.bf16.vlgmr.msra.gmra.mrb[0].mxu1 %vm166_vm1, %v210_v11 }
 0x150   :  { %1583 = vmatprep.mubr.msk.bf16.mxu1 %vm1925_vm0, %v1924_v0  ;;  %1582 = vmatpush3.bf16.xpose.msra.mxu1 %v386_v16 }
 0x151   :  { %1593 = vmatprep.subr.bf16.mxu1 %v1924_v0 }
 0x222   :  { %v264_v23 = vpop.f32.mrb[0].mxu1 }
 0x223   :  { %v278_v24 = vrot.slane %v264_v23, %v277_v22  ;;  %v1573_v25 = vpop.f32.mrb[1].mxu1  ;;  %v271_v36 = vcombine.high %v264_v23, %v264_v23 }
 0x224   :  { %v267_v26 = vpop.f32.mrb[2].mxu1 }
 0x225   :  { %v286_v27 = vcombine.high %v278_v24, %v278_v24  ;;  %v294_v28 = vrot.slane %v278_v24, %v277_v22  ;;  %v1574_v29 = vpop.f32.mrb[3].mxu1  ;;  %v285_v40 = vrot.slane %v271_v36, %v277_v22 }
 0x227   :  { %v308_v31 = vrot.slane %v286_v27, %v277_v22  ;;  %v328_v33 = vpack.c.bf16 %v294_v28, %v294_v28  ;;  %v316_v38 = vcombine.high %v294_v28, %v294_v28  ;;  %v287_v45 = vcombine.high %v285_v40, %v285_v40 }
 0x228   :  { %v301_v48 = vrot.slane %v285_v40, %v277_v22 }
 0x229   :  { %v329_v35 = vpack.c.bf16 %v308_v31, %v308_v31  ;;  %1578 = vmatmul.mubr.msk.bf16.vlgmr.msra.gmra.mrb[4].mxu0 %vm166_vm1, %v328_v33  ;;  %v318_v41 = vcombine.high %v308_v31, %v308_v31  ;;  %v330_v43 = vpack.c.bf16 %v316_v38, %v316_v38  ;;  %v315_v50 = vrot.slane %v287_v45, %v277_v22 }
 0x22a   :  { %1588 = vmatpush3.bf16.xpose.msra.mxu0 %v432_v34  ;;  %1589 = vmatprep.mubr.msk.bf16.mxu0 %vm1925_vm0, %v1924_v0  ;;  %v332_v52 = vpack.c.bf16 %v301_v48, %v301_v48  ;;  %v317_v56 = vcombine.high %v301_v48, %v301_v48 }
 0x22b   :  { %1584 = vmatmul.mubr.msk.bf16.vlgmr.msra.gmra.mrb[4].mxu1 %vm166_vm1, %v329_v35  ;;  %1599 = vmatprep.subr.bf16.mxu0 %v1924_v0  ;;  %v331_v46 = vpack.c.bf16 %v318_v41, %v318_v41  ;;  %v333_v54 = vpack.c.bf16 %v315_v50, %v315_v50  ;;  %v319_v57 = vcombine.high %v315_v50, %v315_v50 }
 0x22c   :  { %1594 = vmatpush3.bf16.xpose.msra.mxu1 %v478_v37  ;;  %1595 = vmatprep.mubr.msk.bf16.mxu1 %vm1925_vm0, %v1924_v0  ;;  %v334_v58 = vpack.c.bf16 %v317_v56, %v317_v56 }
 0x22d   :  { %1605 = vmatprep.subr.bf16.mxu1 %v1924_v0  ;;  %v335_v59 = vpack.c.bf16 %v319_v57, %v319_v57 }
 0x231   :  { %1590 = vmatmul.mubr.msk.bf16.vlgmr.msra.gmra.mrb[8].mxu0 %vm166_vm1, %v330_v43 }
 0x232   :  { %1600 = vmatpush3.bf16.xpose.msra.mxu0 %v524_v44  ;;  %1601 = vmatprep.mubr.msk.bf16.mxu0 %vm1925_vm0, %v1924_v0 }
 0x233   :  { %1596 = vmatmul.mubr.msk.bf16.vlgmr.msra.gmra.mrb[8].mxu1 %vm166_vm1, %v331_v46  ;;  %1611 = vmatprep.subr.bf16.mxu0 %v1924_v0 }
 0x234   :  { %1606 = vmatpush3.bf16.xpose.msra.mxu1 %v570_v47  ;;  %1607 = vmatprep.mubr.msk.bf16.mxu1 %vm1925_vm0, %v1924_v0 }
 0x235   :  { %1617 = vmatprep.subr.bf16.mxu1 %v1924_v0 }
 0x239   :  { %1602 = vmatmul.mubr.msk.bf16.vlgmr.msra.gmra.mrb[12].mxu0 %vm166_vm1, %v332_v52 }
 0x23a   :  { %1612 = vmatpush3.bf16.xpose.msra.mxu0 %v616_v53  ;;  %1613 = vmatprep.mubr.msk.bf16.mxu0 %vm1925_vm0, %v1924_v0 }
 0x23b   :  { %1608 = vmatmul.mubr.msk.bf16.vlgmr.msra.gmra.mrb[12].mxu1 %vm166_vm1, %v333_v54  ;;  %1623 = vmatprep.subr.bf16.mxu0 %v1924_v0 }
 0x23c   :  { %1618 = vmatpush3.bf16.xpose.msra.mxu1 %v662_v55  ;;  %1619 = vmatprep.mubr.msk.bf16.mxu1 %vm1925_vm0, %v1924_v0 }
 0x23d   :  { %1629 = vmatprep.subr.bf16.mxu1 %v1924_v0 }
 0x241   :  { %1614 = vmatmul.mubr.msk.bf16.vlgmr.msra.gmra.mrb[16].mxu0 %vm166_vm1, %v334_v58 }
 0x242   :  { %1625 = vmatprep.mubr.msk.bf16.mxu0 %vm1925_vm0, %v1924_v0 }
 0x243   :  { %1620 = vmatmul.mubr.msk.bf16.vlgmr.msra.gmra.mrb[16].mxu1 %vm166_vm1, %v335_v59 }
 0x244   :  { %1631 = vmatprep.mubr.msk.bf16.mxu1 %vm1925_vm0, %v1924_v0 }
 0x2fc   :  { %v2155_v60 = vpop.f32.mrb[4].mxu0 }
 0x2fd   :  { %v1579_v61 = vpop.f32.mrb[5].mxu0 }
 0x2fe   :  { %v379_v62 = vpop.f32.mrb[6].mxu0  ;;  %v422_v63 = vpop.f32.mrb[4].mxu1 }
 0x2ff   :  { %v720_v1 = vrot.slane %v422_v63, 7  ;;  %v1580_v2 = vpop.f32.mrb[7].mxu0  ;;  %v1585_v3 = vpop.f32.mrb[5].mxu1 }
 0x300   :  { %v425_v4 = vpop.f32.mrb[6].mxu1 }
 0x301   :  { %v722_v5 = vsel %vm721_vm2, %v720_v1, %v2155_v60  ;;  %v1586_v6 = vpop.f32.mrb[7].mxu1 }
 0x304   :  { %v468_v7 = vpop.f32.mrb[8].mxu0 }
 0x305   :  { %v723_v9 = vrot.slane %v468_v7, 6  ;;  %v1591_v10 = vpop.f32.mrb[9].mxu0 }
 0x306   :  { %v471_v11 = vpop.f32.mrb[10].mxu0  ;;  %v514_v12 = vpop.f32.mrb[8].mxu1 }
 0x307   :  { %v725_v13 = vsel %vm724_vm3, %v723_v9, %v722_v5  ;;  %v726_v14 = vrot.slane %v514_v12, 5  ;;  %v1592_v15 = vpop.f32.mrb[11].mxu0  ;;  %v1597_v16 = vpop.f32.mrb[9].mxu1 }
 0x308   :  { %v517_v17 = vpop.f32.mrb[10].mxu1 }
 0x309   :  { %v728_v18 = vsel %vm727_vm4, %v726_v14, %v725_v13  ;;  %v1598_v19 = vpop.f32.mrb[11].mxu1 }
 0x30c   :  { %v560_v20 = vpop.f32.mrb[12].mxu0 }
 0x30d   :  { %v729_v21 = vrot.slane %v560_v20, 4  ;;  %v1603_v22 = vpop.f32.mrb[13].mxu0 }
 0x30e   :  { %v563_v23 = vpop.f32.mrb[14].mxu0  ;;  %v606_v24 = vpop.f32.mrb[12].mxu1 }
 0x30f   :  { %v731_v25 = vsel %vm730_vm5, %v729_v21, %v728_v18  ;;  %v732_v26 = vrot.slane %v606_v24, 3  ;;  %v1604_v27 = vpop.f32.mrb[15].mxu0  ;;  %v1609_v28 = vpop.f32.mrb[13].mxu1 }
 0x310   :  { %v609_v29 = vpop.f32.mrb[14].mxu1 }
 0x311   :  { %v1610_v30 = vpop.f32.mrb[15].mxu1  ;;  %v734_v31 = vsel %vm733_vm6, %v732_v26, %v731_v25 }
 0x312   :  { %v135_v30 = vld [vmem:[#allocation7] sm:$0xf] }
 0x314   :  { %v652_v32 = vpop.f32.mrb[16].mxu0 }
 0x315   :  { %v735_v33 = vrot.slane %v652_v32, 2  ;;  %v1615_v34 = vpop.f32.mrb[17].mxu0 }
 0x316   :  { %v655_v35 = vpop.f32.mrb[18].mxu0  ;;  %v698_v36 = vpop.f32.mrb[16].mxu1 }
 0x317   :  { %v738_v37 = vrot.slane %v698_v36, 1  ;;  %v1616_v38 = vpop.f32.mrb[19].mxu0  ;;  %v1621_v39 = vpop.f32.mrb[17].mxu1  ;;  %v737_v40 = vsel %vm736_vm7, %v735_v33, %v734_v31  ;;  %v136_v31 = vld [vmem:[#allocation7 + $0x4] sm:$0xf] }
 0x318   :  { %v701_v41 = vpop.f32.mrb[18].mxu1  ;;  %v896_v33 = vsel %vm848_vm10, %v136_v31, 0  ;;  %v137_v35 = vld [vmem:[#allocation7 + $0x8] sm:$0xf] }
 0x319   :  { %v1622_v42 = vpop.f32.mrb[19].mxu1  ;;  %v740_v43 = vsel %vm739_vm8, %v738_v37, %v737_v40  ;;  %1630 = vmatpush3.bf16.msra.mxu1 %v896_v33  ;;  %v942_v37 = vsel %vm848_vm10, %v137_v35, 0  ;;  %v138_v40 = vld [vmem:[#allocation7 + $0xc] sm:$0xf] }
 0x31a   :  { %v743_v44 = vsel %vm742_vm9, %v740_v43, -inf  ;;  %1641 = vmatprep.subr.bf16.mxu1 %v1924_v0 }
 0x31b   :  { %744 = vmax.xlane.f32.xlu0 %v743_v44 }
 0x3a8   :  { %v745_v45 = vpop.xlane.xlu0 %744 }
 0x3a9   :  { %v747_v46 = vrot.slane %v745_v45, 1  ;;  %v748_v47 = vrot.slane %v745_v45, 2  ;;  %v749_v48 = vrot.slane %v745_v45, 3  ;;  %v750_v49 = vrot.slane %v745_v45, 4 }
 0x3aa   :  { %v751_v50 = vrot.slane %v745_v45, 5  ;;  %v752_v51 = vrot.slane %v745_v45, 6  ;;  %v753_v52 = vrot.slane %v745_v45, 7  ;;  %v762_v53 = vsub.f32 %v2155_v60, %v745_v45 }
 0x3ab   :  { %v763_v54 = vsub.f32 %v422_v63, %v747_v46  ;;  %v764_v55 = vsub.f32 %v468_v7, %v748_v47  ;;  %v765_v56 = vsub.f32 %v514_v12, %v749_v48  ;;  %v766_v57 = vsub.f32 %v560_v20, %v750_v49 }
 0x3ac   :  { %v767_v58 = vsub.f32 %v606_v24, %v751_v50  ;;  %v770_v59 = vmul.f32 1.442695, %v762_v53  ;;  %v768_v61 = vsub.f32 %v652_v32, %v752_v51  ;;  %v769_v3 = vsub.f32 %v698_v36, %v753_v52 }
 0x3ad   :  { %v772_v62 = vmul.f32 1.442695, %v763_v54  ;;  %v774_v1 = vmul.f32 1.442695, %v764_v55  ;;  %v776_v2 = vmul.f32 1.442695, %v765_v56 }
 0x3ae   :  { %1708 = vpow2.f32 %v770_v59  ;;  %v778_v4 = vmul.f32 1.442695, %v766_v57  ;;  %v780_v5 = vmul.f32 1.442695, %v767_v58  ;;  %v782_v6 = vmul.f32 1.442695, %v768_v61 }
 0x3af   :  { %1710 = vpow2.f32 %v772_v62  ;;  %v784_v9 = vmul.f32 1.442695, %v769_v3  ;;  %v850_v32 = vsel %vm848_vm10, %v135_v30, 0  ;;  %v988_v51 = vsel %vm848_vm10, %v138_v40, 0  ;;  %v139_v62 = vld [vmem:[#allocation7 + $0x10] sm:$0xf] }
 0x3b0   :  { %1712 = vpow2.f32 %v774_v1  ;;  %1624 = vmatpush3.bf16.msra.mxu0 %v850_v32 }
 0x3b1   :  { %1714 = vpow2.f32 %v776_v2  ;;  %1635 = vmatprep.subr.bf16.mxu0 %v1924_v0 }
 0x3b2   :  { %1716 = vpow2.f32 %v778_v4 }
 0x3b3   :  { %1718 = vpow2.f32 %v780_v5  ;;  %v140_v5 = vld [vmem:[#allocation7 + $0x14] sm:$0xf] }
 0x3b4   :  { %1720 = vpow2.f32 %v782_v6 }
 0x3b5   :  { %1722 = vpow2.f32 %v784_v9 }
 0x3b8   :  { %v1709_v60 = vpop.eup %1708 }
 0x3b9   :  { %v1711_v63 = vpop.eup %1710 }
 0x3ba   :  { %v1713_v7 = vpop.eup %1712  ;;  %v794_v10 = vrot.slane %v1711_v63, 7 }
 0x3bb   :  { %v1715_v11 = vpop.eup %1714  ;;  %v796_v12 = vrot.slane %v1713_v7, 6 }
 0x3bc   :  { %v1717_v13 = vpop.eup %1716  ;;  %v795_v14 = vsel %vm721_vm2, %v794_v10, %v1709_v60  ;;  %v798_v15 = vrot.slane %v1715_v11, 5 }
 0x3bd   :  { %v1719_v16 = vpop.eup %1718  ;;  %v797_v17 = vsel %vm724_vm3, %v796_v12, %v795_v14  ;;  %v800_v18 = vrot.slane %v1717_v13, 4 }
 0x3be   :  { %v1721_v19 = vpop.eup %1720  ;;  %v799_v20 = vsel %vm727_vm4, %v798_v15, %v797_v17  ;;  %v802_v21 = vrot.slane %v1719_v16, 3  ;;  %v141_v15 = vld [vmem:[#allocation7 + $0x18] sm:$0xf] }
 0x3bf   :  { %v1723_v22 = vpop.eup %1722  ;;  %v801_v23 = vsel %vm730_vm5, %v800_v18, %v799_v20  ;;  %v804_v24 = vrot.slane %v1721_v19, 2  ;;  %v1126_v18 = vsel %vm848_vm10, %v141_v15, 0 }
 0x3c0   :  { %v803_v25 = vsel %vm733_vm6, %v802_v21, %v801_v23  ;;  %v806_v26 = vrot.slane %v1723_v22, 1  ;;  %v1704_v23 = vld [vmem:[#allocation10] sm:$0xff]  }
 0x3c1   :  { %v805_v27 = vsel %vm736_vm7, %v804_v24, %v803_v25  ;;  %v1705_v24 = vld [vmem:[#allocation10 + $0x8] sm:$0xff]   ;;  %v1706_v25 = vld [vmem:[#allocation11] sm:$0xff]  }
 0x3c2   :  { %v807_v28 = vsel %vm739_vm8, %v806_v26, %v805_v27 }
 0x3c3   :  { %v809_v29 = vsel %vm742_vm9, %v807_v28, 0.0 }
 0x3c4   :  { %810 = vadd.xlane.f32.xlu0 %v809_v29 }
 0x451   :  { %v811_v34 = vpop.xlane.xlu0 %810 }
 0x452   :  { %1724 = vrcp.f32 %v811_v34 }
 0x45c   :  { %v1725_v36 = vpop.eup %1724 }
 0x45d   :  { %v829_v38 = vmul.f32 %v1725_v36, %v1709_v60  ;;  %v814_v39 = vrot.slane %v1725_v36, 1  ;;  %v815_v41 = vrot.slane %v1725_v36, 2  ;;  %v816_v42 = vrot.slane %v1725_v36, 3 }
 0x45e   :  { %v817_v43 = vrot.slane %v1725_v36, 4  ;;  %v818_v44 = vrot.slane %v1725_v36, 5  ;;  %v819_v45 = vrot.slane %v1725_v36, 6  ;;  %v820_v46 = vrot.slane %v1725_v36, 7 }
 0x45f   :  { %v837_v47 = vpack.c.bf16 %v829_v38, %v829_v38  ;;  %v830_v48 = vmul.f32 %v1711_v63, %v814_v39  ;;  %v831_v49 = vmul.f32 %v1713_v7, %v815_v41  ;;  %v832_v50 = vmul.f32 %v1715_v11, %v816_v42 }
 0x460   :  { %v833_v52 = vmul.f32 %v1717_v13, %v817_v43  ;;  %v834_v56 = vmul.f32 %v1719_v16, %v818_v44  ;;  %v835_v57 = vmul.f32 %v1721_v19, %v819_v45  ;;  %v836_v59 = vmul.f32 %v1723_v22, %v820_v46  ;;  %v142_v16 = vld [vmem:[#allocation7 + $0x1c] sm:$0xf] }
 0x461   :  { %1626 = vmatmul.mubr.msk.bf16.vlgmr.msra.gmra.mrb[20].mxu0 %vm742_vm9, %v837_v47  ;;  %v838_v53 = vpack.c.bf16 %v830_v48, %v830_v48  ;;  %v1434_v54 = vrot.slane %v830_v48, 7  ;;  %v1436_v55 = vrot.slane %v831_v49, 6  ;;  %v1438_v58 = vrot.slane %v832_v50, 5 }
 0x462   :  { %1636 = vmatpush3.bf16.msra.mxu0 %v942_v37  ;;  %1637 = vmatprep.mubr.msk.bf16.mxu0 %vm1925_vm0, %v1924_v0  ;;  %v1440_v2 = vrot.slane %v833_v52, 4  ;;  %v1442_v4 = vrot.slane %v834_v56, 3  ;;  %v1444_v9 = vrot.slane %v835_v57, 2  ;;  %v839_v60 = vpack.c.bf16 %v831_v49, %v831_v49 }
 0x463   :  { %1632 = vmatmul.mubr.msk.bf16.vlgmr.msra.gmra.mrb[20].mxu1 %vm742_vm9, %v838_v53  ;;  %1647 = vmatprep.subr.bf16.mxu0 %v1924_v0  ;;  %v1435_v61 = vsel %vm721_vm2, %v1434_v54, %v829_v38  ;;  %v1034_v63 = vsel %vm848_vm10, %v139_v62, 0  ;;  %v1446_v10 = vrot.slane %v836_v59, 1  ;;  %v840_v12 = vpack.c.bf16 %v832_v50, %v832_v50 }
 0x464   :  { %1642 = vmatpush3.bf16.msra.mxu1 %v988_v51  ;;  %1643 = vmatprep.mubr.msk.bf16.mxu1 %vm1925_vm0, %v1924_v0  ;;  %v1437_v1 = vsel %vm724_vm3, %v1436_v55, %v1435_v61  ;;  %v1080_v13 = vsel %vm848_vm10, %v140_v5, 0  ;;  %v841_v17 = vpack.c.bf16 %v833_v52, %v833_v52  ;;  %v842_v19 = vpack.c.bf16 %v834_v56, %v834_v56 }
 0x465   :  { %1653 = vmatprep.subr.bf16.mxu1 %v1924_v0  ;;  %v1439_v3 = vsel %vm727_vm4, %v1438_v58, %v1437_v1  ;;  %v1172_v20 = vsel %vm848_vm10, %v142_v16, 0  ;;  %v843_v21 = vpack.c.bf16 %v835_v57, %v835_v57  ;;  %v844_v22 = vpack.c.bf16 %v836_v59, %v836_v59 }
 0x466   :  { %v1441_v6 = vsel %vm730_vm5, %v1440_v2, %v1439_v3 }
 0x467   :  { %v1443_v7 = vsel %vm733_vm6, %v1442_v4, %v1441_v6 }
 0x468   :  { %v1445_v11 = vsel %vm736_vm7, %v1444_v9, %v1443_v7 }
 0x469   :  { %1638 = vmatmul.mubr.msk.bf16.vlgmr.msra.gmra.mrb[24].mxu0 %vm742_vm9, %v839_v60  ;;  %v1447_v14 = vsel %vm739_vm8, %v1446_v10, %v1445_v11 }
 0x46a   :  { %1648 = vmatpush3.bf16.msra.mxu0 %v1034_v63  ;;  %1649 = vmatprep.mubr.msk.bf16.mxu0 %vm1925_vm0, %v1924_v0  ;;  %1449 = vst.msk [vmem:[#allocation14] sm:$0xff] %vm742_vm9, %v1447_v14 }
 0x46b   :  { %1644 = vmatmul.mubr.msk.bf16.vlgmr.msra.gmra.mrb[24].mxu1 %vm742_vm9, %v840_v12  ;;  %1659 = vmatprep.subr.bf16.mxu0 %v1924_v0 }
 0x46c   :  { %1654 = vmatpush3.bf16.msra.mxu1 %v1080_v13  ;;  %1655 = vmatprep.mubr.msk.bf16.mxu1 %vm1925_vm0, %v1924_v0 }
 0x46d   :  { %1665 = vmatprep.subr.bf16.mxu1 %v1924_v0 }
 0x471   :  { %1650 = vmatmul.mubr.msk.bf16.vlgmr.msra.gmra.mrb[28].mxu0 %vm742_vm9, %v841_v17 }
 0x472   :  { %1660 = vmatpush3.bf16.msra.mxu0 %v1126_v18  ;;  %1661 = vmatprep.mubr.msk.bf16.mxu0 %vm1925_vm0, %v1924_v0 }
 0x473   :  { %1656 = vmatmul.mubr.msk.bf16.vlgmr.msra.gmra.mrb[28].mxu1 %vm742_vm9, %v842_v19  ;;  %1671 = vmatprep.subr.bf16.mxu0 %v1924_v0 }
 0x474   :  { %1666 = vmatpush3.bf16.msra.mxu1 %v1172_v20  ;;  %1667 = vmatprep.mubr.msk.bf16.mxu1 %vm1925_vm0, %v1924_v0 }
 0x475   :  { %1679 = vmatprep.subr.bf16.mxu1 %v1924_v0 }
 0x479   :  { %1662 = vmatmul.mubr.msk.bf16.vlgmr.msra.gmra.mrb[32].mxu0 %vm742_vm9, %v843_v21 }
 0x47a   :  { %1675 = vmatprep.mubr.msk.bf16.mxu0 %vm1925_vm0, %v1924_v0  ;;  %1672 = vmatpush3.bf16.msra.mxu0 %v1704_v23 }
 0x47b   :  { %1668 = vmatmul.mubr.msk.bf16.vlgmr.msra.gmra.mrb[32].mxu1 %vm742_vm9, %v844_v22  ;;  %1673 = vmatprep.subr.bf16.mxu0 %v1924_v0 }
 0x47c   :  { %1683 = vmatprep.mubr.msk.bf16.mxu1 %vm1925_vm0, %v1924_v0  ;;  %1680 = vmatpush3.bf16.msra.mxu1 %v1706_v25 }
 0x47d   :  { %1681 = vmatprep.subr.bf16.mxu1 %v1924_v0 }
 0x47e   :  { %1674 = vmatpush3.bf16.msra.mxu0 %v1705_v24 }
 0x534   :  { %v886_v26 = vpop.f32.mrb[20].mxu0 }
 0x535   :  { %v1627_v27 = vpop.f32.mrb[21].mxu0  ;;  %v1222_v30 = vpack.c.bf16 %v886_v26, %v886_v26  ;;  %v1707_v26 = vld [vmem:[#allocation11 + $0x8] sm:$0xff]  }
 0x536   :  { %v889_v28 = vpop.f32.mrb[22].mxu0  ;;  %v932_v29 = vpop.f32.mrb[20].mxu1  ;;  %1682 = vmatpush3.bf16.msra.mxu1 %v1707_v26  ;;  %v1505_v27 = vld [vmem:[%s2281_s7] ss:$0 sm:$0xff]  ;;  %s1927_s7 = smov [#allocation14]  }
 0x537   :  { %v1223_v31 = vpack.c.bf16 %v932_v29, %v932_v29  ;;  %v1628_v32 = vpop.f32.mrb[23].mxu0  ;;  %v1633_v33 = vpop.f32.mrb[21].mxu1  ;;  %v1249_v37 = vunpack.c.l.b16 %v1222_v30  ;;  %s1466_s17 = sshll.u32 %s1927_s7, 4  ;;  %s1467_s17 = int_to_ptr.vmem [resolvable:$true] %s1466_s17 }
 0x538   :  { %v935_v34 = vpop.f32.mrb[22].mxu1  ;;  %p1865_p7 = scmp.lt.s32.totalorder %s1467_s17, %s1467_s17 }
 0x539   :  { %v1250_v35 = vunpack.c.l.b16 %v1223_v31  ;;  %v1634_v36 = vpop.f32.mrb[23].mxu1  ;;  %v1509_v34 = vld [vmem:[%s2283_s9] ss:$0 sm:$0xff]  ;;  %s1860_s9 = scalar_lea.vmem %s1467_s17, 128 }
 0x53a   :  { %p1861_p6 = scmp.ne.s32.totalorder %s1467_s17, %s1860_s9  ;;  %p1866_p8 = scmp.lt.s32.totalorder %s1860_s9, %s1860_s9 }
 0x53b   :  { %v1257_v38 = vrot.slane %v1250_v35, 7 }
 0x53c   :  { %v978_v39 = vpop.f32.mrb[24].mxu0  ;;  %p1867_p9 = por %p1866_p8, %p1865_p7 }
 0x53d   :  { %v1258_v40 = vsel %vm721_vm2, %v1257_v38, %v1249_v37  ;;  %v1224_v41 = vpack.c.bf16 %v978_v39, %v978_v39  ;;  %v1639_v42 = vpop.f32.mrb[25].mxu0 }
 0x53e   :  { %v981_v43 = vpop.f32.mrb[26].mxu0  ;;  %v1024_v0 = vpop.f32.mrb[24].mxu1  ;;  %p1868_p10 = pnand %p1867_p9, %p1861_p6 }
 0x53f   :  { %v1251_v44 = vunpack.c.l.b16 %v1224_v41  ;;  %v1225_v45 = vpack.c.bf16 %v1024_v0, %v1024_v0  ;;  %v1640_v46 = vpop.f32.mrb[27].mxu0  ;;  %v1645_v47 = vpop.f32.mrb[25].mxu1 }
 0x540   :  { %v1027_v48 = vpop.f32.mrb[26].mxu1 }
 0x541   :  { %v1259_v49 = vrot.slane %v1251_v44, 6  ;;  %v1252_v50 = vunpack.c.l.b16 %v1225_v45  ;;  %v1646_v51 = vpop.f32.mrb[27].mxu1 }
 0x543   :  { %v1260_v52 = vsel %vm724_vm3, %v1259_v49, %v1258_v40  ;;  %v1261_v53 = vrot.slane %v1252_v50, 5 }
 0x544   :  { %v1070_v54 = vpop.f32.mrb[28].mxu0 }
 0x545   :  { %v1262_v55 = vsel %vm727_vm4, %v1261_v53, %v1260_v52  ;;  %v1226_v56 = vpack.c.bf16 %v1070_v54, %v1070_v54  ;;  %v1651_v57 = vpop.f32.mrb[29].mxu0 }
 0x546   :  { %v1073_v58 = vpop.f32.mrb[30].mxu0  ;;  %v1116_v59 = vpop.f32.mrb[28].mxu1 }
 0x547   :  { %v1253_v61 = vunpack.c.l.b16 %v1226_v56  ;;  %v1227_v62 = vpack.c.bf16 %v1116_v59, %v1116_v59  ;;  %v1652_v1 = vpop.f32.mrb[31].mxu0  ;;  %v1657_v2 = vpop.f32.mrb[29].mxu1 }
 0x548   :  { %v1119_v3 = vpop.f32.mrb[30].mxu1 }
 0x549   :  { %v1263_v4 = vrot.slane %v1253_v61, 4  ;;  %v1254_v5 = vunpack.c.l.b16 %v1227_v62  ;;  %v1658_v6 = vpop.f32.mrb[31].mxu1 }
 0x54b   :  { %v1264_v9 = vsel %vm730_vm5, %v1263_v4, %v1262_v55  ;;  %v1265_v60 = vrot.slane %v1254_v5, 3 }
 0x54c   :  { %v1162_v63 = vpop.f32.mrb[32].mxu0 }
 0x54d   :  { %v1266_v7 = vsel %vm733_vm6, %v1265_v60, %v1264_v9  ;;  %v1228_v10 = vpack.c.bf16 %v1162_v63, %v1162_v63  ;;  %v1663_v11 = vpop.f32.mrb[33].mxu0 }
 0x54e   :  { %v1165_v12 = vpop.f32.mrb[34].mxu0  ;;  %v1208_v13 = vpop.f32.mrb[32].mxu1 }
 0x54f   :  { %v1255_v14 = vunpack.c.l.b16 %v1228_v10  ;;  %v1229_v15 = vpack.c.bf16 %v1208_v13, %v1208_v13  ;;  %v1664_v16 = vpop.f32.mrb[35].mxu0  ;;  %v1669_v17 = vpop.f32.mrb[33].mxu1 }
 0x550   :  { %v1211_v18 = vpop.f32.mrb[34].mxu1 }
 0x551   :  { %v1267_v19 = vrot.slane %v1255_v14, 2  ;;  %v1256_v20 = vunpack.c.l.b16 %v1229_v15  ;;  %v1670_v21 = vpop.f32.mrb[35].mxu1 }
 0x553   :  { %v1268_v22 = vsel %vm736_vm7, %v1267_v19, %v1266_v7  ;;  %v1269_v23 = vrot.slane %v1256_v20, 1 }
 0x555   :  { %v1270_v24 = vsel %vm739_vm8, %v1269_v23, %v1268_v22 }
 0x556   :  { %v1271_v25 = vpack.c.b16 %v1270_v24, %v1270_v24 }
 0x558   :  { %1676 = vmatmul.mubr.msk.bf16.vlgmr.msra.gmra.mrb[36].mxu0 %vm166_vm1, %v1271_v25 }
 0x62b   :  { %v1321_v28 = vpop.f32.mrb[36].mxu0 }
 0x62c   :  { %v1322_v29 = vadd.f32 %v1505_v27, %v1321_v28  ;;  %v1677_v30 = vpop.f32.mrb[37].mxu0 }
 0x62d   :  { %v1324_v31 = vpop.f32.mrb[38].mxu0 }
 0x62e   :  { %v1327_v32 = vpack.c.bf16 %v1322_v29, %v1322_v29  ;;  %v1678_v33 = vpop.f32.mrb[39].mxu0 }
 0x630   :  { %1684 = vmatmul.mubr.msk.bf16.vlgmr.msra.gmra.mrb[36].mxu1 %vm166_vm1, %v1327_v32 }
 0x703   :  { %v1388_v35 = vpop.f32.mrb[36].mxu1 }
 0x704   :  { %v1389_v36 = vadd.f32 %v1509_v34, %v1388_v35  ;;  %v1685_v37 = vpop.f32.mrb[37].mxu1 }
 0x705   :  { %v1391_v38 = vpop.f32.mrb[38].mxu1 }
 0x706   :  { %v1686_v39 = vpop.f32.mrb[39].mxu1  ;;  %v1394_v40 = vadd.f32 %v1389_v36, %v2108_v8 }
 0x708   :  { %v1395_v41 = vsel %vm166_vm1, %v1394_v40, 0.0 }
 0x709   :  { %1396 = vadd.xlane.f32.xlu1 %v1395_v41 }
 0x796   :  { %v1397_v42 = vpop.xlane.xlu1 %1396 }
 0x797   :  { %v1399_v43 = vmul.f32 0.03125, %v1397_v42 }
 0x799   :  { %v1400_v0 = vsub.f32 %v1394_v40, %v1399_v43 }
 0x79b   :  { %v1401_v44 = vmul.f32 %v1400_v0, %v1400_v0 }
 0x79d   :  { %v1402_v45 = vsel %vm166_vm1, %v1401_v44, 0.0 }
 0x79e   :  { %1403 = vadd.xlane.f32.xlu1 %v1402_v45 }
 0x79f   :  { %1871 = shalt.err (!%p1868_p10)
}
 0x7a0   :  { %s1872_s20 = scalar_lea.hbm %s2287_s13, 128 }
 0x7a1   :  { %p1873_p11 = scmp.ne.s32.totalorder %s2287_s13, %s1872_s20  ;;  %p1876_p12 = scmp.lt.u32.totalorder %s1872_s20, %s2287_s13 }
 0x7a3   :  { %p1878_p13 = pnand %p1876_p12, %p1873_p11 }
 0x7a5   :  { %1881 = shalt.err (!%p1878_p13)
}
 0x7a6   :  { %1469 = dma.vmem_to_hbm [thread:$0]  %s1467_s17, 128, %s2287_s13, [#allocation15]   ;;  %v1513_v49 = vld [vmem:[%s2284_s10] ss:$0 sm:$0xff] }
 0x7a7   :  { %v1514_v51 = vld [vmem:[%s2285_s11] ss:$0 sm:$0xff]  ;;  %s1928_s1 = smov [#allocation13]  }
 0x7a8   :  { %s1456_s8 = sshll.u32 %s1928_s1, 4  ;;  %s1457_s8 = int_to_ptr.vmem [resolvable:$true] %s1456_s8 }
 0x7a9   :  { %s1882_s13 = scalar_lea.vmem %s1457_s8, 128  ;;  %p1887_p1 = scmp.lt.s32.totalorder %s1457_s8, %s1457_s8 }
 0x7aa   :  { %p1883_p0 = scmp.ne.s32.totalorder %s1457_s8, %s1882_s13  ;;  %p1888_p2 = scmp.lt.s32.totalorder %s1882_s13, %s1882_s13 }
 0x7ac   :  { %p1889_p3 = por %p1888_p2, %p1887_p1 }
 0x7ae   :  { %p1890_p4 = pnand %p1889_p3, %p1883_p0 }
 0x82b   :  { %v1404_v8 = vpop.xlane.xlu1 %1403 }
 0x82c   :  { %v1405_v46 = vmul.f32 0.03125, %v1404_v8 }
 0x82e   :  { %v1406_v47 = vadd.f32 1e-05, %v1405_v46 }
 0x830   :  { %1726 = vrsqrt.f32 %v1406_v47 }
 0x83a   :  { %v1727_v48 = vpop.eup %1726 }
 0x83b   :  { %v1408_v50 = vmul.f32 %v1727_v48, %v1400_v0 }
 0x83d   :  { %v1416_v52 = vmul.f32 %v1513_v49, %v1408_v50 }
 0x83f   :  { %v1424_v53 = vadd.f32 %v1514_v51, %v1416_v52 }
 0x841   :  { %1425 = vst.msk [vmem:[#allocation13] sm:$0xff] %vm166_vm1, %v1424_v53 }
 0x842   :  { %1893 = shalt.err (!%p1890_p4)
}
 0x843   :  { %s1894_s19 = scalar_lea.hbm %s2286_s12, 128 }
 0x844   :  { %p1895_p5 = scmp.ne.s32.totalorder %s2286_s12, %s1894_s19  ;;  %p1898_p6 = scmp.lt.u32.totalorder %s1894_s19, %s2286_s12 }
 0x846   :  { %p1900_p7 = pnand %p1898_p6, %p1895_p5 }
 0x848   :  { %1903 = shalt.err (!%p1900_p7)
}
 0x849   :  { %1459 = dma.vmem_to_hbm [thread:$0]  %s1457_s8, 128, %s2286_s12, [#allocation4]  }
 0x84a   :  { %1912 = dma.done.wait [#allocation4], 128  }
 0x84b   :  { %1913 = vsyncadd [#allocation4], 4294967168 }
 0x84c   :  { %1914 = dma.done.wait [#allocation15], 128  }
 0x84d   :  { %1915 = vsyncadd [#allocation15], 4294967168 }
 0x84e   :  { %1476 = vsyncpa [#allocation3], 1 }
 0x84f   :  { %1477 = vsyncpa [#allocation6], 1 }
 0x850   :  { %1478 = vsyncpa [#allocation9], 1 }
 0x851   :  { %1479 = vsyncpa [#allocation12], 1 }
 0x852   :  { %1480 = vsyncpa [#allocation4], 1 }
 0x853   :  { %1481 = vsyncpa [#allocation15], 1 }

</bundles_post_ra>
